<compile_context>
chip_gen: v7x
topology: tpu7x:2x2x1
jax: 0.10.0
libtpu: 0.0.40
codegen_flags: <defaults>
</compile_context>

<pallas_src>
import functools

import jax
import jax.numpy as jnp
from jax.experimental import pallas as pl
from jax.experimental.pallas import tpu as pltpu

IGNORE_INDEX = -1
THRESH = 0.7
MIN_KEPT = 100000

_MAX_TN = 8192                    # lane-tile cap (pixels per grid step)
_BLOCK_BYTES = 4 * 1024 * 1024    # target size of the (C, TN) logits block
_HIST_BINS = 256                  # quantile-selection bins over (thresh, 1]


def _ce_prob_kernel(logits_ref, target_ref, out_ref, *, ignore_index):
    """out_ref[0,:] = GT-class softmax prob (1.0 where ignored), out_ref[1,:] = CE."""
    logits = logits_ref[...].astype(jnp.float32)       # (C, TN)
    tgt = target_ref[...]                              # (1, TN) int32
    valid = tgt != ignore_index                        # (1, TN) bool
    tgt_safe = jnp.where(valid, tgt, 0)                # target * valid_mask

    # softmax over the class (sublane) axis -- VPU/XLU/EUP work, hidden under DMA
    m = jnp.max(logits, axis=0, keepdims=True)         # (1, TN)
    e = jnp.exp(logits - m)
    s = jnp.sum(e, axis=0, keepdims=True)              # (1, TN)

    # one-hot gather of the GT-class logit
    class_ids = jax.lax.broadcasted_iota(jnp.int32, logits.shape, 0)
    onehot = class_ids == tgt_safe                     # (C, TN)
    gt_logit = jnp.sum(jnp.where(onehot, logits, 0.0), axis=0, keepdims=True)

    gt_prob = jnp.exp(gt_logit - m) / s
    gt_prob = jnp.where(valid, gt_prob, 1.0)           # matches masked_fill_(~valid, 1)
    ce = -(gt_logit - m - jnp.log(s))                  # -log_softmax(logits)[gt]

    out_ref[...] = jnp.concatenate([gt_prob, ce], axis=0)   # (2, TN)


def _choose_tn(c, hw):
    """Largest multiple-of-128 lane tile keeping the (C, TN) block ~4 MiB."""
    tn = _BLOCK_BYTES // (4 * max(c, 1))
    tn = max(128, min(_MAX_TN, (tn // 128) * 128))
    tn = min(tn, ((hw + 127) // 128) * 128)   # no need to exceed the pixel count
    return tn


def ohem_cross_entropy_2d(pred, target, *, ignore_index=IGNORE_INDEX,
                          thresh=THRESH, min_kept=MIN_KEPT,
                          exact_threshold=False):
    """pred: (B, C, H, W) float logits (NCHW), target: (B, H, W) int."""
    b, c, h, w = pred.shape
    th, tw = target.shape[-2:]
    # TODO(synk): bilinear interpolation (align_corners=True) of pred when the
    # spatial sizes mismatch; only the matching-size path is implemented.
    assert (h, w) == (th, tw), "interpolation path not implemented"

    hw = h * w
    n = b * hw
    tn = _choose_tn(c, hw)
    n_tiles = pl.cdiv(hw, tn)

    logits = pred.reshape(b, c, hw)                       # free reshape, no transpose
    target_flat = target.reshape(b, 1, hw).astype(jnp.int32)

    kern = functools.partial(_ce_prob_kernel, ignore_index=ignore_index)
    packed = pl.pallas_call(
        kern,
        out_shape=jax.ShapeDtypeStruct((b, 2, hw), jnp.float32),
        grid_spec=pltpu.PrefetchScalarGridSpec(
            num_scalar_prefetch=0,
            grid=(b, n_tiles),
            in_specs=[
                pl.BlockSpec((pl.Squeezed(), c, tn), lambda bi, i: (bi, 0, i)),
                pl.BlockSpec((pl.Squeezed(), 1, tn), lambda bi, i: (bi, 0, i)),
            ],
            out_specs=pl.BlockSpec((pl.Squeezed(), 2, tn),
                                   lambda bi, i: (bi, 0, i))),
        compiler_params=pltpu.CompilerParams(
            dimension_semantics=("parallel", "parallel"),
            vmem_limit_bytes=32 * 1024 * 1024),
    )(logits, target_flat)

    gt_prob = packed[:, 0, :]                             # (B, HW)
    ce = packed[:, 1, :]                                  # (B, HW)

    # valid mask recomputed in plain JAX (saves an N-sized kernel output stream)
    valid = target.reshape(b, hw) != ignore_index
    num_valid = jnp.sum(valid)

    if min_kept > 0:
        k = min(n, min_kept)                              # static python int
        p = gt_prob.reshape(-1)
        thresh_f = jnp.float32(thresh)
        if exact_threshold:
            # bit-exact parity with torch.sort (slow O(N log^2 N) path)
            kth = jnp.sort(p)[k - 1]
        else:
            # O(N*K) histogram/quantile selection.  The common case
            # (k-th smallest <= thresh) is detected exactly; otherwise the
            # k-th value is rounded UP to its bin's upper edge
            # (bin width = (1-thresh)/K).
            # TODO(synk): add a refine pass if bit-exact torch.sort parity is
            # required for thresholds above `thresh`.
            edges = thresh + (jnp.arange(1, _HIST_BINS + 1, dtype=jnp.float32)
                              / _HIST_BINS) * (1.0 - thresh)
            edges = edges.at[-1].set(1.0)                 # softmax probs are <= 1.0
            cum = jnp.sum(p[:, None] <= edges[None, :], axis=0)
            kth = edges[jnp.argmax(cum >= k)]
        count_le_thresh = jnp.sum(p <= thresh_f)
        # torch: threshold = thresh; if p_k > thresh: threshold = p_k
        threshold = jnp.where(count_le_thresh >= k, thresh_f, kth)
        kept = gt_prob <= threshold
        # OHEM applied iff not (min_kept > num_valid) and num_valid > 0
        apply_ohem = jnp.logical_and(num_valid >= min_kept, num_valid > 0)
        final_mask = jnp.where(apply_ohem, jnp.logical_and(valid, kept), valid)
    else:
        final_mask = valid

    # CrossEntropyLoss(reduction='mean', ignore_index): sum over kept / #kept.
    # (all-ignored input yields 0/0 = NaN, matching PyTorch)
    fmask = final_mask.astype(jnp.float32)
    return jnp.sum(ce * fmask) / jnp.sum(fmask)


if __name__ == "__main__":
    key = jax.random.PRNGKey(0)
    k_pred, k_tgt = jax.random.split(key)

    B, C, H, W = 2, 4, 16, 16
    pred = jax.random.normal(k_pred, (B, C, H, W), dtype=jnp.float32)
    # targets in [-1, C): includes some ignore_index = -1 pixels
    target = jax.random.randint(k_tgt, (B, H, W), -1, C, dtype=jnp.int32)

    loss = ohem_cross_entropy_2d(pred, target)
    jax.block_until_ready(loss)

    # pure-JAX reference: with min_kept=100000 >> num_valid the OHEM branch is
    # skipped (matches the PyTorch gate), so this is plain ignore-index CE.
    logp = jax.nn.log_softmax(pred, axis=1)
    valid = target != IGNORE_INDEX
    tgt_safe = jnp.where(valid, target, 0)
    ce_ref = -jnp.take_along_axis(logp, tgt_safe[:, None], axis=1)[:, 0]
    ref = jnp.sum(ce_ref * valid) / jnp.sum(valid)
    assert jnp.allclose(loss, ref, rtol=1e-5, atol=1e-5), (loss, ref)

    print("KERNEL_OK")
</pallas_src>

<mosaic_0001>
module attributes {stable_mosaic.version = 11 : i64} {
  func.func @_ce_prob_kernel(%arg0: i32, %arg1: i32, %arg2: memref<1x4x256xf32, #tpu.memory_space<vmem>>, %arg3: memref<1x1x256xi32, #tpu.memory_space<vmem>>, %arg4: memref<1x2x256xf32, #tpu.memory_space<vmem>>) attributes {dimension_semantics = [#tpu.dimension_semantics<parallel>, #tpu.dimension_semantics<parallel>], iteration_bounds = array<i64: 2, 1>, scalar_prefetch = 0 : i64, scratch_operands = 0 : i64, tpu.core_type = #tpu.core_type<tc>, window_params = [{transform_indices = @transform_0, window_bounds = array<i64: 1, 4, 256>}, {transform_indices = @transform_1, window_bounds = array<i64: 1, 1, 256>}, {transform_indices = @transform_2, window_bounds = array<i64: 1, 2, 256>}]} {
    %c0 = arith.constant 0 : index
    %c0_0 = arith.constant 0 : index
    %c0_1 = arith.constant 0 : index
    %0 = vector.load %arg2[%c0, %c0_0, %c0_1] : memref<1x4x256xf32, #tpu.memory_space<vmem>>, vector<1x4x256xf32>
    %1 = vector.shape_cast %0 : vector<1x4x256xf32> to vector<4x256xf32>
    %c0_2 = arith.constant 0 : index
    %c0_3 = arith.constant 0 : index
    %c0_4 = arith.constant 0 : index
    %2 = vector.load %arg3[%c0_2, %c0_3, %c0_4] : memref<1x1x256xi32, #tpu.memory_space<vmem>>, vector<1x1x256xi32>
    %3 = vector.shape_cast %2 : vector<1x1x256xi32> to vector<1x256xi32>
    %c-1_i32 = arith.constant -1 : i32
    %4 = vector.broadcast %c-1_i32 : i32 to vector<1x256xi32>
    %5 = arith.cmpi ne, %3, %4 : vector<1x256xi32>
    %c0_i32 = arith.constant 0 : i32
    %6 = vector.broadcast %c0_i32 : i32 to vector<1x256xi32>
    %7 = arith.select %5, %3, %6 : vector<1x256xi1>, vector<1x256xi32>
    %cst = arith.constant dense<0xFF800000> : vector<256xf32>
    %8 = vector.multi_reduction <maximumf>, %1, %cst [0] : vector<4x256xf32> to vector<256xf32>
    %9 = vector.shape_cast %8 : vector<256xf32> to vector<1x256xf32>
    %10 = vector.broadcast %9 : vector<1x256xf32> to vector<4x256xf32>
    %11 = arith.subf %1, %10 : vector<4x256xf32>
    %12 = math.exp %11 : vector<4x256xf32>
    %cst_5 = arith.constant dense<0.000000e+00> : vector<256xf32>
    %13 = vector.multi_reduction <add>, %12, %cst_5 [0] : vector<4x256xf32> to vector<256xf32>
    %14 = vector.shape_cast %13 : vector<256xf32> to vector<1x256xf32>
    %15 = tpu.iota {dimensions = array<i32: 0>} : vector<4x256xi32>
    %16 = vector.broadcast %7 : vector<1x256xi32> to vector<4x256xi32>
    %17 = arith.cmpi eq, %15, %16 : vector<4x256xi32>
    %cst_6 = arith.constant 0.000000e+00 : f32
    %18 = vector.broadcast %cst_6 : f32 to vector<4x256xf32>
    %19 = arith.select %17, %1, %18 : vector<4x256xi1>, vector<4x256xf32>
    %cst_7 = arith.constant dense<0.000000e+00> : vector<256xf32>
    %20 = vector.multi_reduction <add>, %19, %cst_7 [0] : vector<4x256xf32> to vector<256xf32>
    %21 = vector.shape_cast %20 : vector<256xf32> to vector<1x256xf32>
    %22 = arith.subf %21, %9 : vector<1x256xf32>
    %23 = math.exp %22 : vector<1x256xf32>
    %24 = arith.divf %23, %14 : vector<1x256xf32>
    %cst_8 = arith.constant 1.000000e+00 : f32
    %25 = vector.broadcast %cst_8 : f32 to vector<1x256xf32>
    %26 = arith.select %5, %24, %25 : vector<1x256xi1>, vector<1x256xf32>
    %27 = arith.subf %21, %9 : vector<1x256xf32>
    %28 = math.log %14 : vector<1x256xf32>
    %29 = arith.subf %27, %28 : vector<1x256xf32>
    %cst_9 = arith.constant 0.000000e+00 : f32
    %30 = vector.broadcast %cst_9 : f32 to vector<1x256xf32>
    %31 = arith.subf %30, %29 : vector<1x256xf32>
    %32 = tpu.concatenate %26, %31 in 0 : vector<1x256xf32>, vector<1x256xf32> -> vector<2x256xf32>
    %c0_10 = arith.constant 0 : index
    %c0_11 = arith.constant 0 : index
    %c0_12 = arith.constant 0 : index
    %33 = vector.load %arg4[%c0_10, %c0_11, %c0_12] : memref<1x2x256xf32, #tpu.memory_space<vmem>>, vector<1x2x256xf32>
    %34 = vector.shape_cast %33 : vector<1x2x256xf32> to vector<2x256xf32>
    %35 = vector.shape_cast %32 : vector<2x256xf32> to vector<1x2x256xf32>
    tpu.vector_store %arg4[%c0_10, %c0_11, %c0_12], %35 {strides = array<i32>} : memref<1x2x256xf32, #tpu.memory_space<vmem>>, vector<1x2x256xf32>,
    return
  }
  func.func @transform_0(%arg0: i32, %arg1: i32) -> (i32, i32, i32) {
    %c0_i32 = arith.constant 0 : i32
    %c0_i32_0 = arith.constant 0 : i32
    return %arg0, %c0_i32, %arg1 : i32, i32, i32
  }
  func.func @transform_1(%arg0: i32, %arg1: i32) -> (i32, i32, i32) {
    %c0_i32 = arith.constant 0 : i32
    %c0_i32_0 = arith.constant 0 : i32
    return %arg0, %c0_i32, %arg1 : i32, i32, i32
  }
  func.func @transform_2(%arg0: i32, %arg1: i32) -> (i32, i32, i32) {
    %c0_i32 = arith.constant 0 : i32
    %c0_i32_0 = arith.constant 0 : i32
    return %arg0, %c0_i32, %arg1 : i32, i32, i32
  }
}

</mosaic_0001>

<bundles_post_ra>
// kernel: tpu_custom_call.1
= control target key start
LH: loop header
LB: loop body
LE: loop exit
PB: predicated region body
PF: predicated region fallthrough
CT: control target
= control target key end

     0   :  { %7 = vsyncpa [#allocation3], 0  ;;  %s1005_s0 = inlined_call_operand.hbm [shape: f32[2,4,256], index: 0, kind: input, shape index: {}]   ;;  %s1006_s1 = inlined_call_operand.hbm [shape: s32[2,1,256], index: 1, kind: input, shape index: {}]   ;;  %s1007_s2 = inlined_call_operand.hbm [shape: f32[2,2,256], index: 2, kind: output, shape index: {}]  }
   0x1   :  { %9 = vsyncpa [#allocation3 + $0x1], 0 }
   0x2   :  { %10 = vsyncpa [#allocation6], 0 }
   0x3   :  { %12 = vsyncpa [#allocation6 + $0x1], 0 }
   0x4   :  { %13 = vsyncpa [#allocation4], 0 }
   0x5   :  { %15 = vsyncpa [#allocation4 + $0x1], 0  ;;  %s760_s9 = smov 0   ;;  %s762_s10 = smov 0  }
   0x6   :  { %s764_s11 = smov 0   ;;  %s766_s12 = smov 0  }
   0x7   :  { %s768_s13 = smov 0   ;;  %s770_s14 = smov 0  }
   0x8 LB: > { %s487_s15 = sadd.s32 4294967295, %s739_s14   ;;  %s488_s16 = sadd.s32 4294967294, %s739_s14   ;;  %s739_s14 = sphi %s770_s14, %s21_s14   ;;  %s735_s13 = sphi %s768_s13, %s1027_s13   ;;  %s731_s12 = sphi %s766_s12, %s1026_s12   ;;  %s727_s11 = sphi %s764_s11, %s1025_s11   ;;  %s723_s10 = sphi %s762_s10, %s1024_s10   ;;  %s719_s9 = sphi %s760_s9, %s1023_s9  }
   0x9   : > { %s33_s17 = sadd.s32 1, %s735_s13  ;;  %s42_s18 = sadd.s32 1, %s727_s11 }
   0xa   : > { %p35_p0 = scmp.ge.s32.totalorder %s33_s17, 2  ;;  %p49_p1 = scmp.ne.s32.totalorder %s727_s11, %s723_s10 }
   0xb   : > { %p50_p2 = scmp.eq.s32.totalorder %s739_s14, 0  ;;  %p55_p3 = scmp.ne.s32.totalorder %s723_s10, %s719_s9 }
   0xc   : > { %s1029_s17 = smov (%p35_p0, %s33_s17), 0  ;;  %p56_p5 = scmp.eq.s32.totalorder %s487_s15, 0 }
   0xd   : > { %p801_p4 = por %p50_p2, %p49_p1  ;;  %s37_s20 = ssub.s32 %s735_s13, %s1029_s17 }
   0xe   : > { %p109_p6 = scmp.eq.s32.totalorder %s487_s15, 1  ;;  %p40_p7 = scmp.eq.s32.totalorder %s37_s20, 0 }
   0xf   : > { %p807_p8 = por %p56_p5, %p55_p3  ;;  %p115_p10 = scmp.eq.s32.totalorder %s488_s16, 1 }
  0x10   : > { %p811_p9 = por %p109_p6, %p49_p1  ;;  %p527_p13 = scmp.lt.s32.totalorder %s739_s14, 2 }
  0x11   : > { %s1011_s21 = scalar_select %p807_p8, 1, 0 }
  0x12   : > { %s1012_s22 = scalar_select %p811_p9, 1, 0 }
  0x13   : > { %s816_s23 = scalar_select %p40_p7, %s727_s11, %s42_s18  }
  0x14   : > { %p818_p11 = por %p115_p10, %p55_p3  ;;  %s825_s25 = sand.u32 1, %s727_s11  }
  0x15   : > { %s491_s26 = sshll.u32 %s825_s25, 3  ;;  %s507_s27 = sshll.u32 %s735_s13, 7 }
  0x16   : > { %s1013_s24 = scalar_select %p818_p11, 1, 0 }
  0x17   : > { %s832_s30 = scalar_lea.hbm %s1005_s0, %s507_s27  ;;  %s139_s3 = scalar_lea.vmem [#allocation2], %s491_s26 }
  0x18   : > { %s149_s4 = sshll.u32 %s139_s3, 4  ;;  %p838_p0 = pnand %p527_p13, %p801_p4  ;;  %s834_s4 = int_to_ptr.vmem [resolvable:$true] %s149_s4 }
  0x19   : > { %s136_s6 = scalar_lea.sflag [#allocation3], %s825_s25  ;;  %s593_s7 = scalar_lea.hbm %s832_s30, 128 }
  0x1a   : > { %p594_p3 = scmp.ne.s32.totalorder %s832_s30, %s593_s7  ;;  %p595_p5 = pneg %p838_p0 }
  0x1b   : > { %s598_s16 = scalar_lea.hbm %s1005_s0, 256  ;;  %p599_p4 = scmp.lt.u32.totalorder %s832_s30, %s1005_s0 }
  0x1c   : > { %p596_p6 = pnand %p595_p5, %p594_p3  ;;  %p600_p10 = scmp.lt.u32.totalorder %s598_s16, %s593_s7 }
  0x1d   : > { %p602_p12 = scmp.lt.u32.totalorder %s593_s7, %s832_s30 }
  0x1e   : > { %p597_p7 = pneg %p596_p6  ;;  %p601_p13 = por %p600_p10, %p599_p4 }
  0x20   : > { %p603_p1 = por %p602_p12, %p601_p13 }
  0x22   : > { %p604_p2 = pnand %p603_p1, %p597_p7 }
  0x24   : > { %607 = shalt.err (!%p604_p2)
}
  0x25   : > { %s608_s20 = scalar_lea.vmem %s834_s4, 128  ;;  %s741_s26 = smov [#allocation2]  }
  0x26   : > { %p609_p3 = scmp.ne.s32.totalorder %s834_s4, %s608_s20  ;;  %s613_s27 = sshll.u32 %s741_s26, 4  ;;  %s614_s27 = int_to_ptr.vmem [resolvable:$false] %s613_s27 }
  0x27   : > { %s615_s28 = scalar_lea.vmem %s614_s27, 256  ;;  %p616_p9 = scmp.lt.s32.totalorder %s834_s4, %s614_s27 }
  0x28   : > { %p611_p6 = pnand %p609_p3, %p595_p5  ;;  %p617_p4 = scmp.lt.s32.totalorder %s615_s28, %s608_s20 }
  0x2a   : > { %p612_p11 = pneg %p611_p6  ;;  %p618_p10 = por %p617_p4, %p616_p9 }
  0x2c   : > { %p619_p12 = pnand %p618_p10, %p612_p11 }
  0x2e   : > { %622 = shalt.err (!%p619_p12)
}
  0x2f   : > { %519 = dma.hbm_to_vmem [thread:$0]  (!%p838_p0), %s832_s30, 128, %s834_s4, %s136_s6  }
  0x30   : > { %p1015_p1 = scmp.lt.s32.totalorder %s739_s14, 3  ;;  %p1016_p2 = scmp.ge.s32.totalorder %s739_s14, 1 }
  0x31   : > { %s494_s3 = sshll.u32 %s825_s25, 1  ;;  %s508_s7 = sshll.u32 %s735_s13, 5 }
  0x32   : > { %p874_p7 = pnand %p1016_p2, %p1015_p1  ;;  %s883_s16 = scalar_lea.hbm %s1006_s1, %s508_s7 }
  0x33   : > { %s160_s18 = scalar_lea.vmem [#allocation5], %s494_s3  ;;  %s157_s30 = scalar_lea.sflag [#allocation6], %s825_s25 }
  0x34   : > { %s1017_s29 = scalar_select %p874_p7, 1, 0 }
  0x35   : > { %s170_s19 = sshll.u32 %s160_s18, 4  ;;  %s623_s4 = scalar_lea.hbm %s883_s16, 32  ;;  %s171_s19 = int_to_ptr.vmem [resolvable:$true] %s170_s19 }
  0x36   : > { %p624_p9 = scmp.ne.s32.totalorder %s883_s16, %s623_s4  ;;  %s628_s26 = scalar_lea.hbm %s1006_s1, 64 }
  0x37   : > { %p629_p3 = scmp.lt.u32.totalorder %s883_s16, %s1006_s1  ;;  %p630_p6 = scmp.lt.u32.totalorder %s628_s26, %s623_s4 }
  0x38   : > { %p626_p11 = pnand %p624_p9, %p595_p5  ;;  %p632_p10 = scmp.lt.u32.totalorder %s623_s4, %s883_s16 }
  0x39   : > { %p631_p4 = por %p630_p6, %p629_p3 }
  0x3a   : > { %p627_p13 = pneg %p626_p11 }
  0x3b   : > { %p633_p12 = por %p632_p10, %p631_p4 }
  0x3d   : > { %p634_p1 = pnand %p633_p12, %p627_p13 }
  0x3f   : > { %637 = shalt.err (!%p634_p1)
}
  0x40   : > { %s638_s25 = scalar_lea.vmem %s171_s19, 32  ;;  %s742_s3 = smov [#allocation5]  }
  0x41   : > { %p639_p2 = scmp.ne.s32.totalorder %s171_s19, %s638_s25  ;;  %s643_s7 = sshll.u32 %s742_s3, 4  ;;  %s644_s7 = int_to_ptr.vmem [resolvable:$false] %s643_s7 }
  0x42   : > { %s645_s8 = scalar_lea.vmem %s644_s7, 64  ;;  %p646_p8 = scmp.lt.s32.totalorder %s171_s19, %s644_s7 }
  0x43   : > { %p641_p9 = pnand %p639_p2, %p595_p5  ;;  %p647_p7 = scmp.lt.s32.totalorder %s645_s8, %s638_s25 }
  0x45   : > { %p642_p11 = pneg %p641_p9  ;;  %p648_p3 = por %p647_p7, %p646_p8 }
  0x47   : > { %p649_p6 = pnand %p648_p3, %p642_p11 }
  0x49   : > { %652 = shalt.err (!%p649_p6)
}
  0x4a   : > { %522 = dma.hbm_to_vmem [thread:$0]  (!%p838_p0), %s883_s16, 32, %s171_s19, %s157_s30  }
  0x4b   : > { %p1018_p13 = scmp.ne.s32.totalorder %s1017_s29, 0 }
  0x4c   : > { %s908_s15 = sand.u32 (!%p1018_p13), 1, %s723_s10   ;;  %p1019_p5 = scmp.ne.s32.totalorder (!%p1018_p13), %s1011_s21, 0 }
  0x4d   : > { %179 = sbr.rel (%p1018_p13) target bundleno = 175 (0xaf), region = 28  ;;  %s498_s18 = sshll.u32 (!%p1018_p13), %s908_s15, 3 }
  0x4e   : > { %s182_s4 = scalar_lea.sflag (!%p1018_p13), [#allocation3], %s908_s15  ;;  %s185_s6 = scalar_lea.vmem (!%p1018_p13), [#allocation2], %s498_s18 }
  0x54   : > { %706 = dma.done.wait (%p1019_p5), %s182_s4, 128  }
  0x55   : > { %708 = vsyncadd (%p1019_p5), %s182_s4, 4294967168  ;;  %s499_s5 = sshll.u32 %s908_s15, 1  ;;  %s191_s29 = scalar_lea.sflag [#allocation6], %s908_s15 }
  0x56   : > { %s194_s16 = scalar_lea.vmem [#allocation5], %s499_s5 }
  0x57   : > { %710 = dma.done.wait (%p1019_p5), %s191_s29, 32  }
  0x58   : > { %712 = vsyncadd (%p1019_p5), %s191_s29, 4294967264  ;;  %v269_v0 = vlaneseq  ;;  %vm230_vm0 = vcmask 1043456   ;;  %v223_v4 = vld [vmem:[%s185_s6] sm:$0xff]  ;;  %v926_v5 = vld [vmem:[%s194_s16] sm:$0x3]  ;;  %s500_s21 = sshll.u32 %s908_s15, 2 }
  0x59   : > { %vm225_vm1 = vcmp.ne.s32.totalorder %v926_v5, 4294967295  ;;  %v228_v6 = vcombine.high %v223_v4, %v223_v4  ;;  %v231_v7 = vsel %vm230_vm0, %v223_v4, -inf  ;;  %v743_v63 = vmov 1966171168   ;;  %s219_s19 = scalar_lea.vmem [#allocation7], %s500_s21  ;;  %s509_s20 = sshll.u32 %s731_s12, 6 }
  0x5a   : > { %v922_v1 = vshrl.u32 %v269_v0, 7  ;;  %v226_v8 = vsel %vm225_vm1, %v926_v5, 0  ;;  %v232_v9 = vrot.slane %v231_v7, 4  ;;  %v311_v0 = vunpack.c.l.s4 %v743_v63  ;;  %s377_s30 = sshll.u32 %s219_s19, 4  ;;  %s958_s28 = scalar_lea.hbm %s1007_s2, %s509_s20  ;;  %s953_s30 = int_to_ptr.vmem [resolvable:$true] %s377_s30 }
  0x5b   : > { %v238_v10 = vsel %vm230_vm0, %v228_v6, -inf  ;;  %vm345_vm4 = vcmask 1040384   ;;  %s361_s25 = scalar_lea.sflag [#allocation4], %s908_s15  ;;  %s653_s3 = scalar_lea.vmem %s953_s30, 64 }
  0x5c   : > { %v273_v2 = vsub.s32 0, %v922_v1  ;;  %v277_v3 = vsub.s32 1, %v922_v1  ;;  %v233_v13 = vmax.f32 %v231_v7, %v232_v9  ;;  %v239_v14 = vrot.slane %v238_v10, 4  ;;  %p654_p8 = scmp.ne.s32.totalorder %s953_s30, %s653_s3  ;;  %p1020_p0 = scmp.ne.s32.totalorder %s1012_s22, 0 }
  0x5d   : > { %v312_v7 = vunpack.c.0.s8 %v311_v0  ;;  %s744_s12 = smov [#allocation7]  }
  0x5e   : > { %v274_v11 = vrot.slane %v226_v8, %v273_v2  ;;  %v278_v12 = vrot.slane %v226_v8, %v277_v3  ;;  %v234_v15 = vrot.slane %v233_v13, 2  ;;  %v240_v16 = vmax.f32 %v238_v10, %v239_v14  ;;  %p655_p7 = pnand %p654_p8, %p1020_p0  ;;  %s657_s7 = sshll.u32 %s744_s12, 4  ;;  %s658_s7 = int_to_ptr.vmem [resolvable:$false] %s657_s7 }
  0x5f   : > { %s659_s8 = scalar_lea.vmem %s658_s7, 128  ;;  %p660_p10 = scmp.lt.s32.totalorder %s953_s30, %s658_s7 }
  0x60   : > { %vm279_vm2 = vcmp.eq.s32.totalorder %v922_v1, %v274_v11  ;;  %vm280_vm3 = vcmp.eq.s32.totalorder %v922_v1, %v278_v12  ;;  %v235_v19 = vmax.f32 %v233_v13, %v234_v15  ;;  %v241_v20 = vrot.slane %v240_v16, 2  ;;  %p656_p4 = pneg %p655_p7  ;;  %p661_p12 = scmp.lt.s32.totalorder %s659_s8, %s653_s3 }
  0x61   : > { %v281_v17 = vsel %vm279_vm2, %v223_v4, 0.0  ;;  %v282_v18 = vsel %vm280_vm3, %v228_v6, 0.0  ;;  %v315_v15 = vsub.s32 %v312_v7, %v922_v1 }
  0x62   : > { %v283_v21 = vsel %vm230_vm0, %v281_v17, 0.0  ;;  %v236_v22 = vrot.slane %v235_v19, 1  ;;  %v242_v23 = vmax.f32 %v240_v16, %v241_v20  ;;  %v290_v24 = vsel %vm230_vm0, %v282_v18, 0.0  ;;  %p662_p1 = por %p661_p12, %p660_p10 }
  0x63   : > { %v284_v27 = vrot.slane %v283_v21, 4  ;;  %v291_v28 = vrot.slane %v290_v24, 4 }
  0x64   : > { %v237_v25 = vmax.f32 %v235_v19, %v236_v22  ;;  %v243_v26 = vrot.slane %v242_v23, 1  ;;  %p663_p2 = pnand %p662_p1, %p656_p4 }
  0x65   : > { %v285_v31 = vadd.f32 %v284_v27, %v283_v21  ;;  %v292_v32 = vadd.f32 %v291_v28, %v290_v24 }
  0x66   : > { %v244_v29 = vmax.f32 %v242_v23, %v243_v26 }
  0x67   : > { %v286_v35 = vrot.slane %v285_v31, 2  ;;  %v293_v36 = vrot.slane %v292_v32, 2 }
  0x68   : > { %v247_v30 = vcombine.low %v237_v25, %v244_v29 }
  0x69   : > { %v287_v37 = vadd.f32 %v286_v35, %v285_v31  ;;  %v294_v38 = vadd.f32 %v293_v36, %v292_v32 }
  0x6a   : > { %v249_v33 = vsub.f32 %v223_v4, %v247_v30 }
  0x6b   : > { %v288_v39 = vrot.slane %v287_v37, 1  ;;  %v295_v40 = vrot.slane %v294_v38, 1 }
  0x6c   : > { %v250_v34 = vmul.f32 1.442695, %v249_v33 }
  0x6d   : > { %v289_v42 = vadd.f32 %v288_v39, %v287_v37  ;;  %v296_v45 = vadd.f32 %v295_v40, %v294_v38 }
  0x6e   : > { %579 = vpow2.f32 %v250_v34 }
  0x6f   : > { %v297_v50 = vsub.f32 %v289_v42, %v237_v25  ;;  %v298_v51 = vsub.f32 %v296_v45, %v244_v29 }
  0x71   : > { %v299_v56 = vmul.f32 1.442695, %v297_v50  ;;  %v301_v57 = vmul.f32 1.442695, %v298_v51 }
  0x73   : > { %581 = vpow2.f32 %v299_v56 }
  0x74   : > { %583 = vpow2.f32 %v301_v57 }
  0x78   : > { %v580_v41 = vpop.eup %579 }
  0x79   : > { %v253_v43 = vcombine.high %v580_v41, %v580_v41  ;;  %v255_v44 = vsel %vm230_vm0, %v580_v41, 0.0 }
  0x7a   : > { %v256_v46 = vrot.slane %v255_v44, 4 }
  0x7b   : > { %v262_v47 = vsel %vm230_vm0, %v253_v43, 0.0 }
  0x7c   : > { %v257_v48 = vadd.f32 %v256_v46, %v255_v44  ;;  %v263_v49 = vrot.slane %v262_v47, 4 }
  0x7d   : > { %v582_v4 = vpop.eup %581 }
  0x7e   : > { %v258_v52 = vrot.slane %v257_v48, 2  ;;  %v264_v53 = vadd.f32 %v263_v49, %v262_v47  ;;  %v584_v6 = vpop.eup %583 }
  0x80   : > { %v259_v54 = vadd.f32 %v258_v52, %v257_v48  ;;  %v265_v55 = vrot.slane %v264_v53, 2 }
  0x82   : > { %v260_v58 = vrot.slane %v259_v54, 1  ;;  %v266_v59 = vadd.f32 %v265_v55, %v264_v53 }
  0x84   : > { %v261_v60 = vadd.f32 %v260_v58, %v259_v54  ;;  %v267_v61 = vrot.slane %v266_v59, 1 }
  0x86   : > { %v268_v62 = vadd.f32 %v267_v61, %v266_v59  ;;  %585 = vrcp.f32 %v261_v60 }
  0x87   : > { %587 = vlog2.f32 %v261_v60 }
  0x88   : > { %589 = vrcp.f32 %v268_v62 }
  0x89   : > { %591 = vlog2.f32 %v268_v62 }
  0x90   : > { %v586_v8 = vpop.eup %585 }
  0x91   : > { %v588_v9 = vpop.eup %587  ;;  %v304_v10 = vmul.f32 %v586_v8, %v582_v4 }
  0x92   : > { %v590_v11 = vpop.eup %589  ;;  %v327_v12 = vmul.f32 0.6931472, %v588_v9 }
  0x93   : > { %v592_v13 = vpop.eup %591  ;;  %v306_v14 = vmul.f32 %v590_v11, %v584_v6 }
  0x94   : > { %v329_v16 = vmul.f32 0.6931472, %v592_v13  ;;  %v330_v18 = vsub.f32 %v297_v50, %v327_v12 }
  0x95   : > { %v309_v17 = vcombine.low %v304_v10, %v306_v14 }
  0x96   : > { %v331_v19 = vsub.f32 %v298_v51, %v329_v16  ;;  %v332_v22 = vsub.f32 0.0, %v330_v18 }
  0x97   : > { %v316_v20 = vrot.slane %v309_v17, %v315_v15 }
  0x98   : > { %v333_v23 = vsub.f32 0.0, %v331_v19 }
  0x99   : > { %v323_v21 = vrot.slane %v316_v20, %v315_v15 }
  0x9b   : > { %v325_v24 = vsel %vm225_vm1, %v323_v21, 1.0 }
  0x9c   : > { %v338_v25 = vrot.slane %v325_v24, %v273_v2  ;;  %v342_v26 = vrot.slane %v325_v24, %v277_v3 }
  0x9e   : > { %v346_v27 = vsel %vm345_vm4, %v338_v25, %v332_v22  ;;  %v347_v28 = vsel %vm345_vm4, %v342_v26, %v333_v23 }
  0x9f   : > { %v350_v29 = vcombine.low %v346_v27, %v347_v28 }
  0xa1   : > { %501 = vst.sshfl [vmem:[%s219_s19] sm:$0x33 pattern:$0x76325410] %v350_v29 }
  0xa2   : > { %666 = shalt.err (!%p663_p2)
}
  0xa3   : > { %s667_s15 = scalar_lea.hbm %s958_s28, 64  ;;  %s671_s6 = scalar_lea.hbm %s1007_s2, 128 }
  0xa4   : > { %p668_p9 = scmp.ne.s32.totalorder %s958_s28, %s667_s15  ;;  %p672_p6 = scmp.lt.u32.totalorder %s958_s28, %s1007_s2 }
  0xa5   : > { %p673_p13 = scmp.lt.u32.totalorder %s671_s6, %s667_s15  ;;  %p675_p8 = scmp.lt.u32.totalorder %s667_s15, %s958_s28 }
  0xa6   : > { %p669_p11 = pnand %p668_p9, %p1020_p0 }
  0xa7   : > { %p674_p5 = por %p673_p13, %p672_p6 }
  0xa8   : > { %p670_p3 = pneg %p669_p11 }
  0xa9   : > { %p676_p7 = por %p675_p8, %p674_p5 }
  0xab   : > { %p677_p4 = pnand %p676_p7, %p670_p3 }
  0xad   : > { %680 = shalt.err (!%p677_p4)
}
  0xae   : > { %514 = dma.vmem_to_hbm [thread:$0]  (%p1020_p0), %s953_s30, 64, %s958_s28, %s361_s25  }
  0xaf PF: > { %s389_s16 = sand.u32 1, %s719_s9   ;;  %p1021_p10 = scmp.ne.s32.totalorder %s1013_s24, 0 }
  0xb0   : > { %p1022_p12 = scmp.ge.s32.totalorder %s739_s14, 2  ;;  %s390_s21 = scalar_lea.sflag [#allocation4], %s389_s16 }
  0xb2   : > { %p524_p1 = pnand %p1022_p12, %p1021_p10 }
  0xb4   : > { %714 = dma.done.wait (!%p524_p1), %s390_s21, 64  }
  0xb5   : > { %716 = vsyncadd (!%p524_p1), %s390_s21, 4294967232  ;;  %s21_s14 = sadd.s32 1, %s739_s14   ;;  %s1023_s9 = smov %s723_s10 }
  0xb6   : > { %p18_p2 = scmp.ge.s32.totalorder %s21_s14, 4   ;;  %s1024_s10 = smov %s727_s11 }
  0xb7   : > { %s1025_s11 = smov %s816_s23  ;;  %s1026_s12 = smov %s735_s13 }
  0xb8   : > { %s1027_s13 = smov %s1029_s17  ;;  %20 = sbr.rel (!%p18_p2) target bundleno = 8 (0x8), region = 86 }
  0xbf   :  { %395 = vsyncpa [#allocation3], 1 }
  0xc0   :  { %397 = vsyncpa [#allocation3 + $0x1], 1 }
  0xc1   :  { %398 = vsyncpa [#allocation6], 1 }
  0xc2   :  { %400 = vsyncpa [#allocation6 + $0x1], 1 }
  0xc3   :  { %401 = vsyncpa [#allocation4], 1 }
  0xc4   :  { %403 = vsyncpa [#allocation4 + $0x1], 1 }

</bundles_post_ra>
